<compile_context>
chip_gen: v6e
topology: v6e:2x2x1
jax: 0.10.0
libtpu: 0.0.40
codegen_flags: <defaults>
</compile_context>

<pallas_src>
import functools

import jax
import jax.numpy as jnp
from jax.experimental import pallas as pl
from jax.experimental.pallas import tpu as pltpu

_LANE = 128


def _round_up(v, m):
    return ((v + m - 1) // m) * m


def _vmem_budget_bytes():
    """~75% of physical per-core VMEM (≈48 MiB on v7x, ≈96 MiB on v5e/v6e)."""
    try:
        cap = pltpu.get_tpu_info().vmem_capacity_bytes
    except Exception:
        cap = 64 * 1024 * 1024  # conservative (v7x-sized) fallback
    return int(cap) * 3 // 4


def _pick_tile(n_pad, candidates):
    for t in candidates:
        if t <= n_pad and n_pad % t == 0:
            return t
    return n_pad


# --------------------------------------------------------------------------
# Fused single-call path (small graphs): everything VMEM-resident.
# --------------------------------------------------------------------------
def _fused_gcn_kernel(x_ref, adj_ref, *refs, num_layers):
    """All DenseGCNConv layers + ReLU in one kernel.

    refs layout: w_0, b_0, w_1, b_1, ..., out_0, out_1, ...
    """
    w_refs = [refs[2 * i] for i in range(num_layers)]
    b_refs = [refs[2 * i + 1] for i in range(num_layers)]
    out_refs = list(refs[2 * num_layers:])

    # adj arrives as bf16 (0/1 entries are exact); upcast once so all math and
    # MXU accumulation stay f32.
    # TODO(synk): run the aggregation matmul with both operands in bf16 once a
    # ~1e-3 output tolerance is acceptable (2x MXU throughput on v5e/v6e/v7x).
    adj = adj_ref[...].astype(jnp.float32)

    # D^-1/2 computed once (adj is layer-invariant); adj_norm never materialized.
    deg = jnp.maximum(jnp.sum(adj, axis=-1, keepdims=True), 1.0)   # [N, 1]
    d = jax.lax.rsqrt(deg)

    h = x_ref[...]
    for i in range(num_layers):
        hw = jnp.dot(h, w_refs[i][...], preferred_element_type=jnp.float32)
        # (d * adj * d.T) @ hw == d * (adj @ (d * hw))  -- no [N,N] temp.
        agg = jnp.dot(adj, d * hw, preferred_element_type=jnp.float32)
        out = jnp.maximum(d * agg + b_refs[i][...], 0.0)
        out_refs[i][...] = out.astype(out_refs[i].dtype)
        h = out


def _fused_vmem_bytes(n_pad, fin, fout_pads):
    total = n_pad * n_pad * 2          # adj bf16 input buffer
    total += n_pad * n_pad * 4         # in-kernel f32 upcast of adj
    total += n_pad * fin * 4           # x
    total += 2 * sum(n_pad * fp * 4 for fp in fout_pads)   # outputs + temps
    prev = fin
    for fp in fout_pads:
        total += (prev * fp + fp) * 4
        prev = fp
    return total


def _fused_call(x_p, adj_bf16, ws, bs, n_pad, fin, fout_pads, budget):
    num_layers = len(ws)
    flat_wb = []
    for w, b in zip(ws, bs):
        flat_wb.extend([w, b])

    kernel = functools.partial(_fused_gcn_kernel, num_layers=num_layers)

    in_specs = [pl.BlockSpec(x_p.shape, lambda: (0, 0)),
                pl.BlockSpec(adj_bf16.shape, lambda: (0, 0))]
    for arr in flat_wb:
        in_specs.append(pl.BlockSpec(arr.shape, lambda: (0, 0)))

    out_shape = tuple(jax.ShapeDtypeStruct((n_pad, fp), jnp.float32)
                      for fp in fout_pads)
    out_specs = [pl.BlockSpec((n_pad, fp), lambda: (0, 0)) for fp in fout_pads]

    flops = 0
    prev = fin
    for fp in fout_pads:
        flops += 2 * n_pad * prev * fp + 2 * n_pad * n_pad * fp
        prev = fp
    bytes_accessed = (adj_bf16.size * 2 + x_p.size * 4
                      + sum(a.size * 4 for a in flat_wb)
                      + sum(n_pad * fp * 4 for fp in fout_pads))

    return pl.pallas_call(
        kernel,
        out_shape=out_shape,
        in_specs=in_specs,
        out_specs=out_specs,
        compiler_params=pltpu.CompilerParams(vmem_limit_bytes=budget),
        cost_estimate=pl.CostEstimate(flops=flops, transcendentals=n_pad,
                                      bytes_accessed=bytes_accessed),
    )(x_p, adj_bf16, *flat_wb)


# --------------------------------------------------------------------------
# Gridded per-layer path (larger graphs): row/K-blocked, pipelined.
# --------------------------------------------------------------------------
def _degree_kernel(adj_ref, d_ref, acc_ref):
    k = pl.program_id(1)

    @pl.when(k == 0)
    def _():
        acc_ref[...] = jnp.zeros_like(acc_ref)

    acc_ref[...] += jnp.sum(adj_ref[...].astype(jnp.float32), axis=-1,
                            keepdims=True)

    @pl.when(k == pl.num_programs(1) - 1)
    def _():
        d_ref[...] = jax.lax.rsqrt(jnp.maximum(acc_ref[...], 1.0))


def _transform_kernel(h_ref, w_ref, d_ref, s_ref):
    # s = d * (h @ W): elementwise path kept f32 (v5e VPU has no bf16).
    hw = jnp.dot(h_ref[...], w_ref[...], preferred_element_type=jnp.float32)
    s_ref[...] = d_ref[...] * hw


def _aggregate_kernel(adj_ref, s_ref, d_ref, b_ref, o_ref, acc_ref):
    k = pl.program_id(1)

    @pl.when(k == 0)
    def _():
        acc_ref[...] = jnp.zeros_like(acc_ref)

    adj_blk = adj_ref[...].astype(jnp.float32)   # 0/1 bf16 -> exact f32
    acc_ref[...] += jnp.dot(adj_blk, s_ref[...],
                            preferred_element_type=jnp.float32)

    @pl.when(k == pl.num_programs(1) - 1)
    def _():
        out = d_ref[...] * acc_ref[...] + b_ref[...]
        o_ref[...] = jnp.maximum(out, 0.0).astype(o_ref.dtype)


def _gridded_call(x_p, adj_bf16, ws, bs, n_pad, fin, fout_pads, budget):
    num_layers = len(ws)
    tm = _pick_tile(n_pad, (256, 128))
    # K-tile of adj ~2x smaller on v7x (64 MiB VMEM) than on v5e/v6e (128 MiB).
    tk_prefs = (512, 256, 128) if budget > 80 * 1024 * 1024 else (256, 128)
    tk = _pick_tile(n_pad, tk_prefs)
    num_i = n_pad // tm
    num_k = n_pad // tk

    cp_2d = pltpu.CompilerParams(
        dimension_semantics=("parallel", "arbitrary"),
        vmem_limit_bytes=budget)
    cp_1d = pltpu.CompilerParams(
        dimension_semantics=("parallel",),
        vmem_limit_bytes=budget)

    # D^-1/2, computed once for all layers.
    d = pl.pallas_call(
        _degree_kernel,
        out_shape=jax.ShapeDtypeStruct((n_pad, 1), jnp.float32),
        grid=(num_i, num_k),
        in_specs=[pl.BlockSpec((tm, tk), lambda i, k: (i, k))],
        out_specs=pl.BlockSpec((tm, 1), lambda i, k: (i, 0)),
        scratch_shapes=[pltpu.VMEM((tm, 1), jnp.float32)],
        compiler_params=cp_2d,
    )(adj_bf16)

    outs = []
    h = x_p
    for li in range(num_layers):
        w, b = ws[li], bs[li]
        fin_l, fout_pad = w.shape

        # s = d * (h @ W): row-blocked, both v7x TensorCores via "parallel".
        s = pl.pallas_call(
            _transform_kernel,
            out_shape=jax.ShapeDtypeStruct((n_pad, fout_pad), jnp.float32),
            grid=(num_i,),
            in_specs=[pl.BlockSpec((tm, fin_l), lambda i: (i, 0)),
                      pl.BlockSpec((fin_l, fout_pad), lambda i: (0, 0)),
                      pl.BlockSpec((tm, 1), lambda i: (i, 0))],
            out_specs=pl.BlockSpec((tm, fout_pad), lambda i: (i, 0)),
            compiler_params=cp_1d,
        )(h, w, d)

        # out = relu(d * (adj @ s) + b): (row, K) grid, K last + "arbitrary",
        # f32 accumulator scratch with pl.when init/finalize.
        flops = 2 * n_pad * n_pad * fout_pad
        bytes_accessed = (adj_bf16.size * 2 + s.size * 4
                          + n_pad * fout_pad * 4 + d.size * 4 + b.size * 4)
        out = pl.pallas_call(
            _aggregate_kernel,
            out_shape=jax.ShapeDtypeStruct((n_pad, fout_pad), jnp.float32),
            grid=(num_i, num_k),
            in_specs=[pl.BlockSpec((tm, tk), lambda i, k: (i, k)),
                      pl.BlockSpec((tk, fout_pad), lambda i, k: (k, 0)),
                      pl.BlockSpec((tm, 1), lambda i, k: (i, 0)),
                      pl.BlockSpec((1, fout_pad), lambda i, k: (0, 0))],
            out_specs=pl.BlockSpec((tm, fout_pad), lambda i, k: (i, 0)),
            scratch_shapes=[pltpu.VMEM((tm, fout_pad), jnp.float32)],
            compiler_params=cp_2d,
            cost_estimate=pl.CostEstimate(flops=flops, transcendentals=0,
                                          bytes_accessed=bytes_accessed),
        )(adj_bf16, s, d, b)

        outs.append(out)
        h = out
    return outs


# --------------------------------------------------------------------------
# Wrapper
# --------------------------------------------------------------------------
def dense_gcn_model_forward(x, adj, params, *, force_gridded=False):
    """DenseGCNModel.forward (inference): list of per-layer embeddings.

    dropout_adj with p=0.0 and eval-mode nn.Dropout are identities, so adj is
    used directly.
    """
    n, fin = x.shape
    num_layers = len(params)
    fouts = [w.shape[1] for (w, _) in params]

    n_pad = _round_up(n, _LANE)
    fout_pads = [_round_up(f, _LANE) for f in fouts]

    # Zero-pad: node dim to 128 lanes (zero rows/cols of adj -> deg clamps to 1
    # on padded rows; zero columns cannot contaminate real rows), output
    # feature dims to 128 lanes (lane-dense stores).  Layer-0's contraction dim
    # is intentionally left unpadded.
    x_p = jnp.pad(x.astype(jnp.float32), ((0, n_pad - n), (0, 0)))
    adj_p = jnp.pad(adj.astype(jnp.float32), ((0, n_pad - n), (0, n_pad - n)))
    adj_bf16 = adj_p.astype(jnp.bfloat16)   # 0/1 entries: exact; half-size DMA

    ws, bs = [], []
    prev = fin
    for (w, b), fout, fout_pad in zip(params, fouts, fout_pads):
        w_p = jnp.pad(w.astype(jnp.float32),
                      ((0, prev - w.shape[0]), (0, fout_pad - fout)))
        b_p = jnp.pad(b.astype(jnp.float32).reshape(1, fout),
                      ((0, 0), (0, fout_pad - fout)))
        ws.append(w_p)
        bs.append(b_p)
        prev = fout_pad

    budget = _vmem_budget_bytes()
    use_fused = (not force_gridded) and (
        _fused_vmem_bytes(n_pad, fin, fout_pads) <= budget // 2)

    if use_fused:
        outs = _fused_call(x_p, adj_bf16, ws, bs, n_pad, fin, fout_pads, budget)
    else:
        outs = _gridded_call(x_p, adj_bf16, ws, bs, n_pad, fin, fout_pads,
                             budget)

    # Slice padded rows / lanes off each embedding.
    return [o[:n, :f] for o, f in zip(outs, fouts)]


def init_params(key, layers_dim):
    """Deterministic glorot-style weights, zero bias (DenseGCNConv init style)."""
    params = []
    for i in range(len(layers_dim) - 1):
        key, wk = jax.random.split(key)
        fin, fout = layers_dim[i], layers_dim[i + 1]
        scale = jnp.sqrt(6.0 / (fin + fout)).astype(jnp.float32)
        w = jax.random.uniform(wk, (fin, fout), jnp.float32, -scale, scale)
        b = jnp.zeros((fout,), jnp.float32)
        params.append((w, b))
    return params


if __name__ == "__main__":
    key = jax.random.PRNGKey(0)
    k_x, k_adj, k_p, k_x2, k_adj2 = jax.random.split(key, 5)

    layers_dim = [32, 64, 32]            # DenseGCNModel(layers_dim) -> 2 layers
    params = init_params(k_p, layers_dim)

    def make_graph(kx, ka, n):
        x = jax.random.normal(kx, (n, layers_dim[0]), jnp.float32)
        a = jax.random.uniform(ka, (n, n), jnp.float32)
        adj = ((a + a.T) > 1.2).astype(jnp.float32)   # symmetric 0/1 adjacency
        return x, adj

    def ref_forward(x, adj, params):
        out = x
        embs = []
        for w, b in params:
            deg = jnp.clip(adj.sum(-1, keepdims=True), 1.0, None)
            dd = deg ** -0.5
            adj_n = dd * adj * dd.T
            out = jnp.maximum(adj_n @ (out @ w) + b[None, :], 0.0)
            embs.append(out)
        return embs

    # --- small graph: fully fused single-kernel path --------------------------
    N = 64
    x, adj = make_graph(k_x, k_adj, N)
    fwd = jax.jit(dense_gcn_model_forward)
    embeddings = [jax.block_until_ready(e) for e in fwd(x, adj, params)]
    refs = ref_forward(x, adj, params)
    for e, r in zip(embeddings, refs):
        assert e.shape == r.shape
        assert jnp.max(jnp.abs(e - r)) < 1e-4

    # --- larger graph: row/K-blocked gridded path ------------------------------
    N2 = 300
    x2, adj2 = make_graph(k_x2, k_adj2, N2)
    fwd_grid = jax.jit(
        functools.partial(dense_gcn_model_forward, force_gridded=True))
    embeddings2 = [jax.block_until_ready(e) for e in fwd_grid(x2, adj2, params)]
    refs2 = ref_forward(x2, adj2, params)
    for e, r in zip(embeddings2, refs2):
        assert e.shape == r.shape
        assert jnp.max(jnp.abs(e - r)) < 1e-4

    print("KERNEL_OK")
</pallas_src>

<mosaic_0001>
module attributes {stable_mosaic.version = 11 : i64} {
  func.func @_fused_gcn_kernel(%arg0: memref<128x32xf32, #tpu.memory_space<vmem>>, %arg1: memref<128x128xbf16, #tpu.memory_space<vmem>>, %arg2: memref<32x128xf32, #tpu.memory_space<vmem>>, %arg3: memref<1x128xf32, #tpu.memory_space<vmem>>, %arg4: memref<128x128xf32, #tpu.memory_space<vmem>>, %arg5: memref<1x128xf32, #tpu.memory_space<vmem>>, %arg6: memref<128x128xf32, #tpu.memory_space<vmem>>, %arg7: memref<128x128xf32, #tpu.memory_space<vmem>>) attributes {dimension_semantics = [], scalar_prefetch = 0 : i64, scratch_operands = 0 : i64, tpu.core_type = #tpu.core_type<tc>} {
    %c0 = arith.constant 0 : index
    %c0_0 = arith.constant 0 : index
    %0 = vector.load %arg1[%c0, %c0_0] : memref<128x128xbf16, #tpu.memory_space<vmem>>, vector<128x128xbf16>
    %1 = arith.extf %0 : vector<128x128xbf16> to vector<128x128xf32>
    %cst = arith.constant dense<0.000000e+00> : vector<128xf32>
    %2 = vector.multi_reduction <add>, %1, %cst [1] : vector<128x128xf32> to vector<128xf32>
    %3 = vector.shape_cast %2 : vector<128xf32> to vector<128x1xf32>
    %cst_1 = arith.constant 1.000000e+00 : f32
    %4 = vector.broadcast %cst_1 : f32 to vector<128x1xf32>
    %5 = arith.maximumf %3, %4 : vector<128x1xf32>
    %6 = math.rsqrt %5 : vector<128x1xf32>
    %c0_2 = arith.constant 0 : index
    %c0_3 = arith.constant 0 : index
    %7 = vector.load %arg0[%c0_2, %c0_3] : memref<128x32xf32, #tpu.memory_space<vmem>>, vector<128x32xf32>
    %c0_4 = arith.constant 0 : index
    %c0_5 = arith.constant 0 : index
    %8 = vector.load %arg2[%c0_4, %c0_5] : memref<32x128xf32, #tpu.memory_space<vmem>>, vector<32x128xf32>
    %cst_6 = arith.constant dense<0.000000e+00> : vector<128x128xf32>
    %9 = tpu.matmul %7, %8, %cst_6 {dimension_numbers = #tpu.dot_dimension_numbers<[1], [0], [0], [1], [0, 0, 1, 1], [], []>} : vector<128x32xf32>, vector<32x128xf32>, vector<128x128xf32> -> vector<128x128xf32>
    %10 = vector.broadcast %6 : vector<128x1xf32> to vector<128x128xf32>
    %11 = arith.mulf %10, %9 : vector<128x128xf32>
    %cst_7 = arith.constant dense<0.000000e+00> : vector<128x128xf32>
    %12 = tpu.matmul %1, %11, %cst_7 {dimension_numbers = #tpu.dot_dimension_numbers<[1], [0], [0], [1], [0, 0, 1, 1], [], []>} : vector<128x128xf32>, vector<128x128xf32>, vector<128x128xf32> -> vector<128x128xf32>
    %13 = vector.broadcast %6 : vector<128x1xf32> to vector<128x128xf32>
    %14 = arith.mulf %13, %12 : vector<128x128xf32>
    %c0_8 = arith.constant 0 : index
    %c0_9 = arith.constant 0 : index
    %15 = vector.load %arg3[%c0_8, %c0_9] : memref<1x128xf32, #tpu.memory_space<vmem>>, vector<1x128xf32>
    %16 = vector.broadcast %15 : vector<1x128xf32> to vector<128x128xf32>
    %17 = arith.addf %14, %16 : vector<128x128xf32>
    %cst_10 = arith.constant 0.000000e+00 : f32
    %18 = vector.broadcast %cst_10 : f32 to vector<128x128xf32>
    %19 = arith.maximumf %17, %18 : vector<128x128xf32>
    %c0_11 = arith.constant 0 : index
    %c0_12 = arith.constant 0 : index
    %20 = vector.load %arg6[%c0_11, %c0_12] : memref<128x128xf32, #tpu.memory_space<vmem>>, vector<128x128xf32>
    tpu.vector_store %arg6[%c0_11, %c0_12], %19 {strides = array<i32>} : memref<128x128xf32, #tpu.memory_space<vmem>>, vector<128x128xf32>,
    %c0_13 = arith.constant 0 : index
    %c0_14 = arith.constant 0 : index
    %21 = vector.load %arg4[%c0_13, %c0_14] : memref<128x128xf32, #tpu.memory_space<vmem>>, vector<128x128xf32>
    %cst_15 = arith.constant dense<0.000000e+00> : vector<128x128xf32>
    %22 = tpu.matmul %19, %21, %cst_15 {dimension_numbers = #tpu.dot_dimension_numbers<[1], [0], [0], [1], [0, 0, 1, 1], [], []>} : vector<128x128xf32>, vector<128x128xf32>, vector<128x128xf32> -> vector<128x128xf32>
    %23 = vector.broadcast %6 : vector<128x1xf32> to vector<128x128xf32>
    %24 = arith.mulf %23, %22 : vector<128x128xf32>
    %cst_16 = arith.constant dense<0.000000e+00> : vector<128x128xf32>
    %25 = tpu.matmul %1, %24, %cst_16 {dimension_numbers = #tpu.dot_dimension_numbers<[1], [0], [0], [1], [0, 0, 1, 1], [], []>} : vector<128x128xf32>, vector<128x128xf32>, vector<128x128xf32> -> vector<128x128xf32>
    %26 = vector.broadcast %6 : vector<128x1xf32> to vector<128x128xf32>
    %27 = arith.mulf %26, %25 : vector<128x128xf32>
    %c0_17 = arith.constant 0 : index
    %c0_18 = arith.constant 0 : index
    %28 = vector.load %arg5[%c0_17, %c0_18] : memref<1x128xf32, #tpu.memory_space<vmem>>, vector<1x128xf32>
    %29 = vector.broadcast %28 : vector<1x128xf32> to vector<128x128xf32>
    %30 = arith.addf %27, %29 : vector<128x128xf32>
    %cst_19 = arith.constant 0.000000e+00 : f32
    %31 = vector.broadcast %cst_19 : f32 to vector<128x128xf32>
    %32 = arith.maximumf %30, %31 : vector<128x128xf32>
    %c0_20 = arith.constant 0 : index
    %c0_21 = arith.constant 0 : index
    %33 = vector.load %arg7[%c0_20, %c0_21] : memref<128x128xf32, #tpu.memory_space<vmem>>, vector<128x128xf32>
    tpu.vector_store %arg7[%c0_20, %c0_21], %32 {strides = array<i32>} : memref<128x128xf32, #tpu.memory_space<vmem>>, vector<128x128xf32>,
    return
  }
}

</mosaic_0001>

<bundles_post_ra>
// kernel: dense_gcn_model_forward.1
= control target key start
LH: loop header
LB: loop body
LE: loop exit
PB: predicated region body
PF: predicated region fallthrough
CT: control target
= control target key end

     0   :  { %vm141_vm0 = vcmask 261120   ;;  %s1949_s2 = inlined_call_operand.vmem [shape: f32[32,128], index: 2, kind: input, shape index: {}]   ;;  %s1950_s0 = inlined_call_operand.vmem [shape: f32[128,32], index: 0, kind: input, shape index: {}]   ;;  %s1951_s1 = inlined_call_operand.vmem [shape: bf16[128,128], index: 1, kind: input, shape index: {}]   ;;  %s1952_s4 = inlined_call_operand.vmem [shape: f32[128,128], index: 4, kind: input, shape index: {}]   ;;  %s1953_s3 = inlined_call_operand.vmem [shape: f32[1,128], index: 3, kind: input, shape index: {}]   ;;  %s1954_s6 = inlined_call_operand.vmem [shape: f32[128,128], index: 6, kind: output, shape index: {0}]   ;;  %s1955_s5 = inlined_call_operand.vmem [shape: f32[1,128], index: 5, kind: input, shape index: {}]   ;;  %s1956_s7 = inlined_call_operand.vmem [shape: f32[128,128], index: 7, kind: output, shape index: {1}]  }
   0x1   :  { %v140_v0 = vld [vmem:[%s1949_s2 + $0x18] sm:$0xff]  ;;  %v139_v1 = vld [vmem:[%s1949_s2 + $0x10] sm:$0xff]  ;;  %v121_v2 = vld [vmem:[%s1950_s0] sm:$0xff] }
   0x2   :  { %1141 = vmatprep.subr.mxu0 %v140_v0  ;;  %v138_v3 = vld [vmem:[%s1949_s2 + $0x8] sm:$0xff]  ;;  %1149 = vmatprep.mubr.msk.f32.mxu0 %vm141_vm0, %v121_v2  ;;  %v1024_v4 = vld [vmem:[%s1951_s1 + $0x38] sm:$0xff]   ;;  %v137_v5 = vld [vmem:[%s1949_s2] sm:$0xff] }
   0x3   :  { %1142 = vmatpush3.msra.mxu0 %v140_v0  ;;  %v1464_v6 = vunpack.c.h.bf16 %v1024_v4  ;;  %v1023_v7 = vld [vmem:[%s1951_s1 + $0x30] sm:$0xff]   ;;  %v122_v9 = vld [vmem:[%s1950_s0 + $0x8] sm:$0xff]  ;;  %v1475_v10 = vunpack.c.l.bf16 %v1024_v4  ;;  %v987_v14 = vld [vmem:[%s1951_s1] sm:$0xff]  }
   0x4   :  { %1143 = vmatprep.subr.mxu0 %v139_v1  ;;  %v1469_v8 = vunpack.c.h.bf16 %v1023_v7  ;;  %v123_v11 = vld [vmem:[%s1950_s0 + $0x10] sm:$0xff]  ;;  %v1481_v12 = vunpack.c.l.bf16 %v1023_v7  ;;  %v1022_v13 = vld [vmem:[%s1951_s1 + $0x28] sm:$0xff]   ;;  %v124_v15 = vld [vmem:[%s1950_s0 + $0x18] sm:$0xff]  ;;  %v1497_v17 = vunpack.c.l.bf16 %v987_v14  ;;  %v1580_v41 = vunpack.c.h.bf16 %v987_v14 }
   0x5   :  { %1144 = vmatpush3.msra.mxu0 %v139_v1  ;;  %87 = vadd.xlane.f32.xlu0 %v1464_v6  ;;  %v1495_v16 = vunpack.c.h.bf16 %v1022_v13  ;;  %v125_v18 = vld [vmem:[%s1950_s0 + $0x20] sm:$0xff]  ;;  %v1503_v19 = vunpack.c.l.bf16 %v1022_v13  ;;  %v126_v21 = vld [vmem:[%s1950_s0 + $0x28] sm:$0xff]  ;;  %v127_v23 = vld [vmem:[%s1950_s0 + $0x30] sm:$0xff] }
   0x6   :  { %1145 = vmatprep.subr.mxu0 %v138_v3  ;;  %83 = vadd.xlane.f32.xlu1 %v1469_v8  ;;  %v1021_v20 = vld [vmem:[%s1951_s1 + $0x20] sm:$0xff]   ;;  %v1020_v25 = vld [vmem:[%s1951_s1 + $0x18] sm:$0xff]   ;;  %v1019_v30 = vld [vmem:[%s1951_s1 + $0x10] sm:$0xff]  }
   0x7   :  { %1146 = vmatpush3.msra.mxu0 %v138_v3  ;;  %1205 = vmatprep.mubr.f32.mxu1 %v1497_v17  ;;  %v1515_v22 = vunpack.c.h.bf16 %v1021_v20  ;;  %v1521_v24 = vunpack.c.l.bf16 %v1021_v20  ;;  %v128_v26 = vld [vmem:[%s1950_s0 + $0x38] sm:$0xff]  ;;  %v1532_v27 = vunpack.c.h.bf16 %v1020_v25  ;;  %v129_v28 = vld [vmem:[%s1950_s0 + $0x40] sm:$0xff]  ;;  %v1538_v29 = vunpack.c.l.bf16 %v1020_v25  ;;  %v130_v31 = vld [vmem:[%s1950_s0 + $0x48] sm:$0xff] }
   0x8   :  { %1147 = vmatprep.subr.mxu0 %v137_v5  ;;  %v1549_v32 = vunpack.c.h.bf16 %v1019_v30  ;;  %v131_v33 = vld [vmem:[%s1950_s0 + $0x50] sm:$0xff]  ;;  %v1555_v34 = vunpack.c.l.bf16 %v1019_v30  ;;  %v1018_v35 = vld [vmem:[%s1951_s1 + $0x8] sm:$0xff]   ;;  %v132_v36 = vld [vmem:[%s1950_s0 + $0x58] sm:$0xff] }
   0x9   :  { %1148 = vmatpush3.msra.mxu0 %v137_v5  ;;  %85 = vadd.xlane.f32.xlu0 %v1475_v10  ;;  %v1566_v37 = vunpack.c.h.bf16 %v1018_v35  ;;  %v133_v38 = vld [vmem:[%s1950_s0 + $0x60] sm:$0xff]  ;;  %v1572_v39 = vunpack.c.l.bf16 %v1018_v35  ;;  %v134_v40 = vld [vmem:[%s1950_s0 + $0x68] sm:$0xff]  ;;  %v135_v42 = vld [vmem:[%s1950_s0 + $0x70] sm:$0xff] }
   0xa   :  { %1150 = vmatmul.mubr.msk.f32.vlgmr.msra.gmra.mxu0 %vm141_vm0, %v122_v9  ;;  %81 = vadd.xlane.f32.xlu1 %v1481_v12  ;;  %v136_v43 = vld [vmem:[%s1950_s0 + $0x78] sm:$0xff]  ;;  %v581_v45 = vld [vmem:[%s1952_s4 + $0x70] sm:$0xff]  ;;  %v580_v46 = vld [vmem:[%s1952_s4 + $0x68] sm:$0xff] }
   0xb   :  { %1152 = vmatprep.mubr.msk.f32.mxu0 %vm141_vm0, %v123_v11  ;;  %v582_v44 = vld [vmem:[%s1952_s4 + $0x78] sm:$0xff]  ;;  %v579_v47 = vld [vmem:[%s1952_s4 + $0x60] sm:$0xff]  ;;  %v577_v49 = vld [vmem:[%s1952_s4 + $0x50] sm:$0xff] }
   0xc   :  { %1229 = vmatprep.subr.mxu0 %v582_v44  ;;  %v578_v48 = vld [vmem:[%s1952_s4 + $0x58] sm:$0xff]  ;;  %v576_v50 = vld [vmem:[%s1952_s4 + $0x48] sm:$0xff]  ;;  %v575_v51 = vld [vmem:[%s1952_s4 + $0x40] sm:$0xff] }
   0xd   :  { %79 = vadd.xlane.f32.xlu0 %v1495_v16  ;;  %1230 = vmatpush3.msra.mxu0 %v582_v44  ;;  %v574_v52 = vld [vmem:[%s1952_s4 + $0x38] sm:$0xff]  ;;  %v573_v53 = vld [vmem:[%s1952_s4 + $0x30] sm:$0xff]  ;;  %v572_v54 = vld [vmem:[%s1952_s4 + $0x28] sm:$0xff] }
   0xe   :  { %1153 = vmatmul.mubr.msk.f32.gmra.mxu0 %vm141_vm0, %v124_v15  ;;  %77 = vadd.xlane.f32.xlu1 %v1503_v19 }
   0xf   :  { %1155 = vmatprep.mubr.msk.f32.mxu0 %vm141_vm0, %v125_v18  ;;  %1231 = vmatprep.subr.mxu0 %v581_v45 }
  0x10   :  { %1232 = vmatpush3.msra.mxu0 %v581_v45 }
  0x11   :  { %75 = vadd.xlane.f32.xlu0 %v1515_v22  ;;  %1233 = vmatprep.subr.mxu0 %v580_v46 }
  0x12   :  { %1156 = vmatmul.mubr.msk.f32.gmra.mxu0 %vm141_vm0, %v126_v21  ;;  %73 = vadd.xlane.f32.xlu1 %v1521_v24 }
  0x13   :  { %1158 = vmatprep.mubr.msk.f32.mxu0 %vm141_vm0, %v127_v23  ;;  %1234 = vmatpush3.msra.mxu0 %v580_v46 }
  0x14   :  { %1235 = vmatprep.subr.mxu0 %v579_v47 }
  0x15   :  { %71 = vadd.xlane.f32.xlu0 %v1532_v27  ;;  %1236 = vmatpush3.msra.mxu0 %v579_v47 }
  0x16   :  { %1159 = vmatmul.mubr.msk.f32.gmra.mxu0 %vm141_vm0, %v128_v26  ;;  %69 = vadd.xlane.f32.xlu1 %v1538_v29 }
  0x17   :  { %1161 = vmatprep.mubr.msk.f32.mxu0 %vm141_vm0, %v129_v28  ;;  %1237 = vmatprep.subr.mxu0 %v578_v48 }
  0x18   :  { %1238 = vmatpush3.msra.mxu0 %v578_v48 }
  0x19   :  { %67 = vadd.xlane.f32.xlu0 %v1549_v32  ;;  %1239 = vmatprep.subr.mxu0 %v577_v49 }
  0x1a   :  { %1162 = vmatmul.mubr.msk.f32.gmra.mxu0 %vm141_vm0, %v130_v31  ;;  %65 = vadd.xlane.f32.xlu1 %v1555_v34 }
  0x1b   :  { %1164 = vmatprep.mubr.msk.f32.mxu0 %vm141_vm0, %v131_v33  ;;  %1240 = vmatpush3.msra.mxu0 %v577_v49 }
  0x1c   :  { %1241 = vmatprep.subr.mxu0 %v576_v50 }
  0x1d   :  { %63 = vadd.xlane.f32.xlu0 %v1566_v37  ;;  %1242 = vmatpush3.msra.mxu0 %v576_v50 }
  0x1e   :  { %1165 = vmatmul.mubr.msk.f32.gmra.mxu0 %vm141_vm0, %v132_v36  ;;  %61 = vadd.xlane.f32.xlu1 %v1572_v39 }
  0x1f   :  { %1167 = vmatprep.mubr.msk.f32.mxu0 %vm141_vm0, %v133_v38  ;;  %1243 = vmatprep.subr.mxu0 %v575_v51 }
  0x20   :  { %1244 = vmatpush3.msra.mxu0 %v575_v51 }
  0x21   :  { %59 = vadd.xlane.f32.xlu0 %v1580_v41  ;;  %1245 = vmatprep.subr.mxu0 %v574_v52 }
  0x22   :  { %1168 = vmatmul.mubr.msk.f32.gmra.mxu0 %vm141_vm0, %v134_v40  ;;  %57 = vadd.xlane.f32.xlu1 %v1497_v17 }
  0x23   :  { %1170 = vmatprep.mubr.msk.f32.mxu0 %vm141_vm0, %v135_v42  ;;  %1246 = vmatpush3.msra.mxu0 %v574_v52 }
  0x24   :  { %1247 = vmatprep.subr.mxu0 %v573_v53 }
  0x25   :  { %1248 = vmatpush3.msra.mxu0 %v573_v53 }
  0x26   :  { %1171 = vmatmul.mubr.msk.f32.gmra.mxu0 %vm141_vm0, %v136_v43  ;;  %1249 = vmatprep.subr.mxu0 %v572_v54 }
  0x27   :  { %1250 = vmatpush3.msra.mxu0 %v572_v54 }
  0x8e   :  { %v88_v55 = vpop.xlane.xlu0 %87 }
  0x8f   :  { %v84_v56 = vpop.xlane.xlu1 %83  ;;  %v104_v2 = vmax.f32 %v88_v55, 1.0 }
  0x90   :  { %v102_v11 = vmax.f32 %v84_v56, 1.0 }
  0x91   :  { %1373 = vrsqrt.f32 %v104_v2 }
  0x92   :  { %v86_v57 = vpop.xlane.xlu0 %85 }
  0x93   :  { %v82_v58 = vpop.xlane.xlu1 %81  ;;  %v103_v5 = vmax.f32 %v86_v57, 1.0 }
  0x94   :  { %v101_v14 = vmax.f32 %v82_v58, 1.0 }
  0x95   :  { %1375 = vrsqrt.f32 %v103_v5 }
  0x96   :  { %v80_v61 = vpop.xlane.xlu0 %79  ;;  %1377 = vrsqrt.f32 %v102_v11 }
  0x97   :  { %v78_v63 = vpop.xlane.xlu1 %77  ;;  %v100_v20 = vmax.f32 %v80_v61, 1.0  ;;  %1379 = vrsqrt.f32 %v101_v14 }
  0x98   :  { %v99_v25 = vmax.f32 %v78_v63, 1.0 }
  0x99   :  { %1381 = vrsqrt.f32 %v100_v20 }
  0x9a   :  { %v76_v3 = vpop.xlane.xlu0 %75  ;;  %1383 = vrsqrt.f32 %v99_v25 }
  0x9b   :  { %v74_v7 = vpop.xlane.xlu1 %73  ;;  %v98_v28 = vmax.f32 %v76_v3, 1.0 }
  0x9c   :  { %v97_v33 = vmax.f32 %v74_v7, 1.0 }
  0x9d   :  { %1385 = vrsqrt.f32 %v98_v28 }
  0x9e   :  { %v72_v15 = vpop.xlane.xlu0 %71  ;;  %v1647_v42 = vpop.eup %1373  ;;  %1387 = vrsqrt.f32 %v97_v33 }
  0x9f   :  { %v70_v21 = vpop.xlane.xlu1 %69  ;;  %v96_v38 = vmax.f32 %v72_v15, 1.0 }
  0xa0   :  { %v95_v43 = vmax.f32 %v70_v21, 1.0 }
  0xa1   :  { %1389 = vrsqrt.f32 %v96_v38 }
  0xa2   :  { %v68_v30 = vpop.xlane.xlu0 %67  ;;  %v1649_v44 = vpop.eup %1375  ;;  %1391 = vrsqrt.f32 %v95_v43 }
  0xa3   :  { %v66_v35 = vpop.xlane.xlu1 %65  ;;  %v94_v47 = vmax.f32 %v68_v30, 1.0  ;;  %v1652_v49 = vpop.eup %1377 }
  0xa4   :  { %v93_v52 = vmax.f32 %v66_v35, 1.0  ;;  %v1655_v54 = vpop.eup %1379 }
  0xa5   :  { %1393 = vrsqrt.f32 %v94_v47 }
  0xa6   :  { %v64_v45 = vpop.xlane.xlu0 %63  ;;  %v1658_v57 = vpop.eup %1381  ;;  %1395 = vrsqrt.f32 %v93_v52 }
  0xa7   :  { %v62_v50 = vpop.xlane.xlu1 %61  ;;  %v92_v55 = vmax.f32 %v64_v45, 1.0  ;;  %v1661_v2 = vpop.eup %1383 }
  0xa8   :  { %v91_v61 = vmax.f32 %v62_v50, 1.0 }
  0xa9   :  { %1397 = vrsqrt.f32 %v92_v55 }
  0xaa   :  { %v60_v58 = vpop.xlane.xlu0 %59  ;;  %v1664_v11 = vpop.eup %1385  ;;  %1399 = vrsqrt.f32 %v91_v61 }
  0xab   :  { %v58_v3 = vpop.xlane.xlu1 %57  ;;  %v90_v5 = vmax.f32 %v60_v58, 1.0  ;;  %v1667_v20 = vpop.eup %1387 }
  0xac   :  { %v89_v14 = vmax.f32 %v58_v3, 1.0 }
  0xad   :  { %1401 = vrsqrt.f32 %v90_v5 }
  0xae   :  { %v1671_v25 = vpop.eup %1389  ;;  %1403 = vrsqrt.f32 %v89_v14 }
  0xaf   :  { %v1675_v28 = vpop.eup %1391 }
  0xca   :  { %v1627_v59 = vpop.f32.mrf.mxu0 }
  0xcc   :  { %v1629_v60 = vpop.f32.mrf.mxu0 }
  0xce   :  { %v1631_v62 = vpop.f32.mrf.mxu0 }
  0xd0   :  { %v1633_v0 = vpop.f32.mrf.mxu0 }
  0xd2   :  { %v1635_v1 = vpop.f32.mrf.mxu0 }
  0xd4   :  { %v1637_v4 = vpop.f32.mrf.mxu0 }
  0xd6   :  { %v1639_v9 = vpop.f32.mrf.mxu0 }
  0xd7   :  { %v342_v30 = vmul.f32 %v1671_v25, %v1639_v9 }
  0xd8   :  { %v1641_v13 = vpop.f32.mrf.mxu0 }
  0xda   :  { %v1643_v18 = vpop.f32.mrf.mxu0 }
  0xdb   :  { %v344_v21 = vmul.f32 %v1664_v11, %v1643_v18  ;;  %v341_v18 = vmul.f32 %v1675_v28, %v1641_v13 }
  0xdc   :  { %v1645_v23 = vpop.f32.mrf.mxu0 }
  0xde   :  { %v1166_v26 = vpop.f32.mrf.mxu0 }
  0xdf   :  { %v346_v7 = vmul.f32 %v1658_v57, %v1166_v26  ;;  %v343_v26 = vmul.f32 %v1667_v20, %v1645_v23 }
  0xe0   :  { %v306_v31 = vpop.f32.mrf.mxu0 }
  0xe1   :  { %v345_v15 = vmul.f32 %v1661_v2, %v306_v31  ;;  %v1679_v31 = vpop.eup %1393 }
  0xe2   :  { %v1169_v36 = vpop.f32.mrf.mxu0  ;;  %v1683_v33 = vpop.eup %1395  ;;  %v340_v23 = vmul.f32 %v1679_v31, %v1635_v1 }
  0xe3   :  { %v348_v56 = vmul.f32 %v1652_v49, %v1169_v36  ;;  %v1687_v35 = vpop.eup %1397  ;;  %v339_v9 = vmul.f32 %v1683_v33, %v1637_v4 }
  0xe4   :  { %v316_v40 = vpop.f32.mrf.mxu0  ;;  %v1691_v36 = vpop.eup %1399  ;;  %v338_v13 = vmul.f32 %v1687_v35, %v1631_v62  ;;  %v569_v62 = vld [vmem:[%s1952_s4 + $0x10] sm:$0xff] }
  0xe5   :  { %v347_v63 = vmul.f32 %v1655_v54, %v316_v40  ;;  %v1695_v38 = vpop.eup %1401  ;;  %v337_v1 = vmul.f32 %v1691_v36, %v1633_v0  ;;  %v567_v0 = vld [vmem:[%s1952_s4] sm:$0xff] }
  0xe6   :  { %v1172_v46 = vpop.f32.mrf.mxu0  ;;  %v1699_v40 = vpop.eup %1403  ;;  %v336_v4 = vmul.f32 %v1695_v38, %v1627_v59  ;;  %v571_v59 = vld [vmem:[%s1952_s4 + $0x20] sm:$0xff] }
  0xe7   :  { %v350_v48 = vmul.f32 %v1647_v42, %v1172_v46  ;;  %v335_v43 = vmul.f32 %v1699_v40, %v1629_v60  ;;  %1251 = vmatprep.subr.mxu0 %v571_v59  ;;  %v570_v60 = vld [vmem:[%s1952_s4 + $0x18] sm:$0xff]  ;;  %v1739_v46 = vld [vmem:[%s1953_s3] ss:$0 sm:$0xff] }
  0xe8   :  { %v326_v51 = vpop.f32.mrf.mxu0  ;;  %1252 = vmatpush3.msra.mxu0 %v571_v59 }
  0xe9   :  { %v349_v53 = vmul.f32 %v1649_v44, %v326_v51  ;;  %1173 = vmatprep.subr.mxu1 %v350_v48  ;;  %1253 = vmatprep.subr.mxu0 %v570_v60 }
  0xea   :  { %1174 = vmatpush3.msra.mxu1 %v350_v48  ;;  %1254 = vmatpush3.msra.mxu0 %v570_v60 }
  0xeb   :  { %1175 = vmatprep.subr.mxu1 %v349_v53  ;;  %1255 = vmatprep.subr.mxu0 %v569_v62 }
  0xec   :  { %1176 = vmatpush3.msra.mxu1 %v349_v53  ;;  %1256 = vmatpush3.msra.mxu0 %v569_v62 }
  0xed   :  { %1177 = vmatprep.subr.mxu1 %v348_v56 }
  0xee   :  { %1178 = vmatpush3.msra.mxu1 %v348_v56 }
  0xef   :  { %1179 = vmatprep.subr.mxu1 %v347_v63 }
  0xf0   :  { %1180 = vmatpush3.msra.mxu1 %v347_v63 }
  0xf1   :  { %1181 = vmatprep.subr.mxu1 %v346_v7 }
  0xf2   :  { %1182 = vmatpush3.msra.mxu1 %v346_v7 }
  0xf3   :  { %1183 = vmatprep.subr.mxu1 %v345_v15 }
  0xf4   :  { %1184 = vmatpush3.msra.mxu1 %v345_v15 }
  0xf5   :  { %1185 = vmatprep.subr.mxu1 %v344_v21 }
  0xf6   :  { %1186 = vmatpush3.msra.mxu1 %v344_v21 }
  0xf7   :  { %1187 = vmatprep.subr.mxu1 %v343_v26 }
  0xf8   :  { %1188 = vmatpush3.msra.mxu1 %v343_v26 }
  0xf9   :  { %1189 = vmatprep.subr.mxu1 %v342_v30 }
  0xfa   :  { %1190 = vmatpush3.msra.mxu1 %v342_v30 }
  0xfb   :  { %1191 = vmatprep.subr.mxu1 %v341_v18 }
  0xfc   :  { %1192 = vmatpush3.msra.mxu1 %v341_v18 }
  0xfd   :  { %1193 = vmatprep.subr.mxu1 %v340_v23 }
  0xfe   :  { %1194 = vmatpush3.msra.mxu1 %v340_v23 }
  0xff   :  { %1195 = vmatprep.subr.mxu1 %v339_v9 }
 0x100   :  { %1196 = vmatpush3.msra.mxu1 %v339_v9 }
 0x101   :  { %1197 = vmatprep.subr.mxu1 %v338_v13 }
 0x102   :  { %1198 = vmatpush3.msra.mxu1 %v338_v13 }
 0x103   :  { %1199 = vmatprep.subr.mxu1 %v337_v1 }
 0x104   :  { %1200 = vmatpush3.msra.mxu1 %v337_v1 }
 0x105   :  { %1201 = vmatprep.subr.mxu1 %v336_v4 }
 0x106   :  { %1202 = vmatpush3.msra.mxu1 %v336_v4 }
 0x107   :  { %1203 = vmatprep.subr.mxu1 %v335_v43 }
 0x108   :  { %1204 = vmatpush3.msra.mxu1 %v335_v43 }
 0x109   :  { %1206 = vmatmul.mubr.f32.vlgmr.msra.gmra.mxu1 %v1580_v41 }
 0x10a   :  { %1208 = vmatprep.mubr.f32.mxu1 %v1572_v39 }
 0x10d   :  { %1209 = vmatmul.mubr.f32.gmra.mxu1 %v1566_v37 }
 0x10e   :  { %1211 = vmatprep.mubr.f32.mxu1 %v1555_v34 }
 0x111   :  { %1212 = vmatmul.mubr.f32.gmra.mxu1 %v1549_v32 }
 0x112   :  { %1214 = vmatprep.mubr.f32.mxu1 %v1538_v29 }
 0x115   :  { %1215 = vmatmul.mubr.f32.gmra.mxu1 %v1532_v27 }
 0x116   :  { %1217 = vmatprep.mubr.f32.mxu1 %v1521_v24 }
 0x119   :  { %1218 = vmatmul.mubr.f32.gmra.mxu1 %v1515_v22 }
 0x11a   :  { %1220 = vmatprep.mubr.f32.mxu1 %v1503_v19 }
 0x11d   :  { %1221 = vmatmul.mubr.f32.gmra.mxu1 %v1495_v16 }
 0x11e   :  { %1223 = vmatprep.mubr.f32.mxu1 %v1481_v12 }
 0x121   :  { %1224 = vmatmul.mubr.f32.gmra.mxu1 %v1469_v8 }
 0x122   :  { %1226 = vmatprep.mubr.f32.mxu1 %v1475_v10 }
 0x125   :  { %1227 = vmatmul.mubr.f32.gmra.mxu1 %v1464_v6 }
 0x126   :  { %1326 = vmatprep.mubr.f32.mxu1 %v1538_v29  ;;  %v568_v29 = vld [vmem:[%s1952_s4 + $0x8] sm:$0xff] }
 0x127   :  { %1257 = vmatprep.subr.mxu0 %v568_v29 }
 0x128   :  { %1258 = vmatpush3.msra.mxu0 %v568_v29 }
 0x129   :  { %1259 = vmatprep.subr.mxu0 %v567_v0 }
 0x12a   :  { %1260 = vmatpush3.msra.mxu0 %v567_v0 }
 0x1c9   :  { %v1207_v45 = vpop.f32.mrf.mxu1 }
 0x1ca   :  { %v497_v47 = vmul.f32 %v1695_v38, %v1207_v45 }
 0x1cb   :  { %v417_v48 = vpop.f32.mrf.mxu1 }
 0x1cc   :  { %v520_v50 = vadd.f32 %v1739_v46, %v497_v47  ;;  %v496_v51 = vmul.f32 %v1699_v40, %v417_v48 }
 0x1cd   :  { %v1210_v52 = vpop.f32.mrf.mxu1 }
 0x1ce   :  { %v536_v53 = vmax.f32 %v520_v50, 0.0  ;;  %v519_v55 = vadd.f32 %v1739_v46, %v496_v51  ;;  %v499_v56 = vmul.f32 %v1687_v35, %v1210_v52 }
 0x1cf   :  { %v427_v58 = vpop.f32.mrf.mxu1 }
 0x1d0   :  { %552 = vst [vmem:[%s1954_s6 + $0x8] sm:$0xff] %v536_v53  ;;  %v535_v61 = vmax.f32 %v519_v55, 0.0  ;;  %v522_v63 = vadd.f32 %v1739_v46, %v499_v56  ;;  %v498_v3 = vmul.f32 %v1691_v36, %v427_v58 }
 0x1d1   :  { %v1213_v5 = vpop.f32.mrf.mxu1 }
 0x1d2   :  { %551 = vst [vmem:[%s1954_s6] sm:$0xff] %v535_v61  ;;  %v538_v7 = vmax.f32 %v522_v63, 0.0  ;;  %v521_v14 = vadd.f32 %v1739_v46, %v498_v3  ;;  %v501_v15 = vmul.f32 %v1679_v31, %v1213_v5  ;;  %1261 = vmatprep.mubr.f32.mxu0 %v535_v61 }
 0x1d3   :  { %v437_v21 = vpop.f32.mrf.mxu1  ;;  %1262 = vmatmul.mubr.f32.vlgmr.msra.gmra.mxu0 %v536_v53 }
 0x1d4   :  { %554 = vst [vmem:[%s1954_s6 + $0x18] sm:$0xff] %v538_v7  ;;  %v537_v26 = vmax.f32 %v521_v14, 0.0  ;;  %v524_v30 = vadd.f32 %v1739_v46, %v501_v15  ;;  %v500_v18 = vmul.f32 %v1683_v33, %v437_v21 }
 0x1d5   :  { %v1216_v23 = vpop.f32.mrf.mxu1 }
 0x1d6   :  { %553 = vst [vmem:[%s1954_s6 + $0x10] sm:$0xff] %v537_v26  ;;  %v540_v9 = vmax.f32 %v524_v30, 0.0  ;;  %v523_v13 = vadd.f32 %v1739_v46, %v500_v18  ;;  %v503_v1 = vmul.f32 %v1671_v25, %v1216_v23  ;;  %1264 = vmatprep.mubr.f32.mxu0 %v537_v26 }
 0x1d7   :  { %v447_v4 = vpop.f32.mrf.mxu1  ;;  %1265 = vmatmul.mubr.f32.gmra.mxu0 %v538_v7 }
 0x1d8   :  { %556 = vst [vmem:[%s1954_s6 + $0x28] sm:$0xff] %v540_v9  ;;  %v539_v43 = vmax.f32 %v523_v13, 0.0  ;;  %v526_v59 = vadd.f32 %v1739_v46, %v503_v1  ;;  %v502_v60 = vmul.f32 %v1675_v28, %v447_v4 }
 0x1d9   :  { %v1219_v62 = vpop.f32.mrf.mxu1 }
 0x1da   :  { %555 = vst [vmem:[%s1954_s6 + $0x20] sm:$0xff] %v539_v43  ;;  %v542_v29 = vmax.f32 %v526_v59, 0.0  ;;  %v525_v0 = vadd.f32 %v1739_v46, %v502_v60  ;;  %v505_v45 = vmul.f32 %v1664_v11, %v1219_v62  ;;  %1267 = vmatprep.mubr.f32.mxu0 %v539_v43 }
 0x1db   :  { %v457_v47 = vpop.f32.mrf.mxu1  ;;  %1268 = vmatmul.mubr.f32.gmra.mxu0 %v540_v9 }
 0x1dc   :  { %558 = vst [vmem:[%s1954_s6 + $0x38] sm:$0xff] %v542_v29  ;;  %v541_v48 = vmax.f32 %v525_v0, 0.0  ;;  %v528_v50 = vadd.f32 %v1739_v46, %v505_v45  ;;  %v504_v51 = vmul.f32 %v1667_v20, %v457_v47 }
 0x1dd   :  { %v1222_v52 = vpop.f32.mrf.mxu1 }
 0x1de   :  { %557 = vst [vmem:[%s1954_s6 + $0x30] sm:$0xff] %v541_v48  ;;  %v544_v53 = vmax.f32 %v528_v50, 0.0  ;;  %v527_v55 = vadd.f32 %v1739_v46, %v504_v51  ;;  %v507_v56 = vmul.f32 %v1658_v57, %v1222_v52  ;;  %1270 = vmatprep.mubr.f32.mxu0 %v541_v48 }
 0x1df   :  { %v467_v58 = vpop.f32.mrf.mxu1  ;;  %1271 = vmatmul.mubr.f32.gmra.mxu0 %v542_v29 }
 0x1e0   :  { %560 = vst [vmem:[%s1954_s6 + $0x48] sm:$0xff] %v544_v53  ;;  %v543_v61 = vmax.f32 %v527_v55, 0.0  ;;  %v530_v63 = vadd.f32 %v1739_v46, %v507_v56  ;;  %v506_v3 = vmul.f32 %v1661_v2, %v467_v58 }
 0x1e1   :  { %v1225_v5 = vpop.f32.mrf.mxu1 }
 0x1e2   :  { %559 = vst [vmem:[%s1954_s6 + $0x40] sm:$0xff] %v543_v61  ;;  %v546_v7 = vmax.f32 %v530_v63, 0.0  ;;  %v529_v14 = vadd.f32 %v1739_v46, %v506_v3  ;;  %v509_v15 = vmul.f32 %v1652_v49, %v1225_v5  ;;  %1273 = vmatprep.mubr.f32.mxu0 %v543_v61 }
 0x1e3   :  { %v477_v21 = vpop.f32.mrf.mxu1  ;;  %1274 = vmatmul.mubr.f32.gmra.mxu0 %v544_v53 }
 0x1e4   :  { %562 = vst [vmem:[%s1954_s6 + $0x58] sm:$0xff] %v546_v7  ;;  %v545_v26 = vmax.f32 %v529_v14, 0.0  ;;  %v532_v30 = vadd.f32 %v1739_v46, %v509_v15  ;;  %v508_v18 = vmul.f32 %v1655_v54, %v477_v21 }
 0x1e5   :  { %v1228_v23 = vpop.f32.mrf.mxu1 }
 0x1e6   :  { %561 = vst [vmem:[%s1954_s6 + $0x50] sm:$0xff] %v545_v26  ;;  %v548_v9 = vmax.f32 %v532_v30, 0.0  ;;  %v531_v13 = vadd.f32 %v1739_v46, %v508_v18  ;;  %v511_v1 = vmul.f32 %v1647_v42, %v1228_v23  ;;  %1276 = vmatprep.mubr.f32.mxu0 %v545_v26 }
 0x1e7   :  { %v487_v4 = vpop.f32.mrf.mxu1  ;;  %1277 = vmatmul.mubr.f32.gmra.mxu0 %v546_v7 }
 0x1e8   :  { %564 = vst [vmem:[%s1954_s6 + $0x68] sm:$0xff] %v548_v9  ;;  %v547_v43 = vmax.f32 %v531_v13, 0.0  ;;  %v534_v59 = vadd.f32 %v1739_v46, %v511_v1  ;;  %v510_v60 = vmul.f32 %v1649_v44, %v487_v4 }
 0x1ea   :  { %563 = vst [vmem:[%s1954_s6 + $0x60] sm:$0xff] %v547_v43  ;;  %v550_v62 = vmax.f32 %v534_v59, 0.0  ;;  %v533_v29 = vadd.f32 %v1739_v46, %v510_v60  ;;  %1279 = vmatprep.mubr.f32.mxu0 %v547_v43 }
 0x1eb   :  { %1280 = vmatmul.mubr.f32.gmra.mxu0 %v548_v9 }
 0x1ec   :  { %566 = vst [vmem:[%s1954_s6 + $0x78] sm:$0xff] %v550_v62  ;;  %v549_v0 = vmax.f32 %v533_v29, 0.0 }
 0x1ee   :  { %565 = vst [vmem:[%s1954_s6 + $0x70] sm:$0xff] %v549_v0  ;;  %1282 = vmatprep.mubr.f32.mxu0 %v549_v0 }
 0x1ef   :  { %1283 = vmatmul.mubr.f32.gmra.mxu0 %v550_v62 }
 0x1f0   :  { %1317 = vmatprep.mubr.f32.mxu0 %v1497_v17 }
 0x293   :  { %v1822_v45 = vpop.f32.mrf.mxu0 }
 0x294   :  { %v729_v60 = vmul.f32 %v1695_v38, %v1822_v45 }
 0x295   :  { %v1824_v47 = vpop.f32.mrf.mxu0 }
 0x296   :  { %v728_v62 = vmul.f32 %v1699_v40, %v1824_v47 }
 0x297   :  { %v1826_v46 = vpop.f32.mrf.mxu0 }
 0x298   :  { %v731_v43 = vmul.f32 %v1687_v35, %v1826_v46 }
 0x299   :  { %v1828_v48 = vpop.f32.mrf.mxu0 }
 0x29a   :  { %v730_v59 = vmul.f32 %v1691_v36, %v1828_v48 }
 0x29b   :  { %v1269_v50 = vpop.f32.mrf.mxu0 }
 0x29c   :  { %v733_v1 = vmul.f32 %v1679_v31, %v1269_v50 }
 0x29d   :  { %v669_v51 = vpop.f32.mrf.mxu0 }
 0x29e   :  { %v732_v4 = vmul.f32 %v1683_v33, %v669_v51 }
 0x29f   :  { %v1272_v52 = vpop.f32.mrf.mxu0 }
 0x2a0   :  { %v735_v9 = vmul.f32 %v1671_v25, %v1272_v52 }
 0x2a1   :  { %v679_v53 = vpop.f32.mrf.mxu0 }
 0x2a2   :  { %v734_v13 = vmul.f32 %v1675_v28, %v679_v53 }
 0x2a3   :  { %v1275_v55 = vpop.f32.mrf.mxu0 }
 0x2a4   :  { %v737_v18 = vmul.f32 %v1664_v11, %v1275_v55 }
 0x2a5   :  { %v689_v56 = vpop.f32.mrf.mxu0 }
 0x2a6   :  { %v736_v23 = vmul.f32 %v1667_v20, %v689_v56 }
 0x2a7   :  { %v1278_v58 = vpop.f32.mrf.mxu0 }
 0x2a8   :  { %v739_v26 = vmul.f32 %v1658_v57, %v1278_v58 }
 0x2a9   :  { %v699_v61 = vpop.f32.mrf.mxu0 }
 0x2aa   :  { %v738_v30 = vmul.f32 %v1661_v2, %v699_v61 }
 0x2ab   :  { %v1281_v63 = vpop.f32.mrf.mxu0 }
 0x2ac   :  { %v741_v15 = vmul.f32 %v1652_v49, %v1281_v63 }
 0x2ad   :  { %v709_v3 = vpop.f32.mrf.mxu0 }
 0x2ae   :  { %v740_v21 = vmul.f32 %v1655_v54, %v709_v3 }
 0x2af   :  { %v1284_v5 = vpop.f32.mrf.mxu0 }
 0x2b0   :  { %v743_v17 = vmul.f32 %v1647_v42, %v1284_v5 }
 0x2b1   :  { %v719_v7 = vpop.f32.mrf.mxu0 }
 0x2b2   :  { %v742_v14 = vmul.f32 %v1649_v44, %v719_v7  ;;  %1285 = vmatprep.subr.mxu0 %v743_v17  ;;  %1341 = vmatprep.subr.mxu1 %v743_v17 }
 0x2b3   :  { %1286 = vmatpush3.msra.mxu0 %v743_v17  ;;  %1357 = vmatpush3.msra.mxu1 %v743_v17 }
 0x2b4   :  { %1287 = vmatprep.subr.mxu0 %v742_v14  ;;  %1342 = vmatprep.subr.mxu1 %v742_v14 }
 0x2b5   :  { %1288 = vmatpush3.msra.mxu0 %v742_v14  ;;  %1358 = vmatpush3.msra.mxu1 %v742_v14 }
 0x2b6   :  { %1289 = vmatprep.subr.mxu0 %v741_v15  ;;  %1343 = vmatprep.subr.mxu1 %v741_v15 }
 0x2b7   :  { %1290 = vmatpush3.msra.mxu0 %v741_v15  ;;  %1359 = vmatpush3.msra.mxu1 %v741_v15 }
 0x2b8   :  { %1291 = vmatprep.subr.mxu0 %v740_v21  ;;  %1344 = vmatprep.subr.mxu1 %v740_v21 }
 0x2b9   :  { %1292 = vmatpush3.msra.mxu0 %v740_v21  ;;  %1360 = vmatpush3.msra.mxu1 %v740_v21 }
 0x2ba   :  { %1293 = vmatprep.subr.mxu0 %v739_v26  ;;  %1345 = vmatprep.subr.mxu1 %v739_v26 }
 0x2bb   :  { %1294 = vmatpush3.msra.mxu0 %v739_v26  ;;  %1361 = vmatpush3.msra.mxu1 %v739_v26 }
 0x2bc   :  { %1295 = vmatprep.subr.mxu0 %v738_v30  ;;  %1346 = vmatprep.subr.mxu1 %v738_v30 }
 0x2bd   :  { %1296 = vmatpush3.msra.mxu0 %v738_v30  ;;  %1362 = vmatpush3.msra.mxu1 %v738_v30 }
 0x2be   :  { %1297 = vmatprep.subr.mxu0 %v737_v18  ;;  %1347 = vmatprep.subr.mxu1 %v737_v18 }
 0x2bf   :  { %1298 = vmatpush3.msra.mxu0 %v737_v18  ;;  %1363 = vmatpush3.msra.mxu1 %v737_v18 }
 0x2c0   :  { %1299 = vmatprep.subr.mxu0 %v736_v23  ;;  %1348 = vmatprep.subr.mxu1 %v736_v23 }
 0x2c1   :  { %1300 = vmatpush3.msra.mxu0 %v736_v23  ;;  %1364 = vmatpush3.msra.mxu1 %v736_v23 }
 0x2c2   :  { %1301 = vmatprep.subr.mxu0 %v735_v9  ;;  %1349 = vmatprep.subr.mxu1 %v735_v9 }
 0x2c3   :  { %1302 = vmatpush3.msra.mxu0 %v735_v9  ;;  %1365 = vmatpush3.msra.mxu1 %v735_v9 }
 0x2c4   :  { %1303 = vmatprep.subr.mxu0 %v734_v13  ;;  %1350 = vmatprep.subr.mxu1 %v734_v13 }
 0x2c5   :  { %1304 = vmatpush3.msra.mxu0 %v734_v13  ;;  %1366 = vmatpush3.msra.mxu1 %v734_v13 }
 0x2c6   :  { %1305 = vmatprep.subr.mxu0 %v733_v1  ;;  %1351 = vmatprep.subr.mxu1 %v733_v1 }
 0x2c7   :  { %1306 = vmatpush3.msra.mxu0 %v733_v1  ;;  %1367 = vmatpush3.msra.mxu1 %v733_v1 }
 0x2c8   :  { %1307 = vmatprep.subr.mxu0 %v732_v4  ;;  %1352 = vmatprep.subr.mxu1 %v732_v4 }
 0x2c9   :  { %1308 = vmatpush3.msra.mxu0 %v732_v4  ;;  %1368 = vmatpush3.msra.mxu1 %v732_v4 }
 0x2ca   :  { %1309 = vmatprep.subr.mxu0 %v731_v43  ;;  %1353 = vmatprep.subr.mxu1 %v731_v43 }
 0x2cb   :  { %1310 = vmatpush3.msra.mxu0 %v731_v43  ;;  %1369 = vmatpush3.msra.mxu1 %v731_v43 }
 0x2cc   :  { %1311 = vmatprep.subr.mxu0 %v730_v59  ;;  %1354 = vmatprep.subr.mxu1 %v730_v59 }
 0x2cd   :  { %1312 = vmatpush3.msra.mxu0 %v730_v59  ;;  %1370 = vmatpush3.msra.mxu1 %v730_v59 }
 0x2ce   :  { %1313 = vmatprep.subr.mxu0 %v729_v60  ;;  %1355 = vmatprep.subr.mxu1 %v729_v60 }
 0x2cf   :  { %1314 = vmatpush3.msra.mxu0 %v729_v60  ;;  %1371 = vmatpush3.msra.mxu1 %v729_v60 }
 0x2d0   :  { %1315 = vmatprep.subr.mxu0 %v728_v62  ;;  %1356 = vmatprep.subr.mxu1 %v728_v62 }
 0x2d1   :  { %1316 = vmatpush3.msra.mxu0 %v728_v62  ;;  %1372 = vmatpush3.msra.mxu1 %v728_v62 }
 0x2d2   :  { %1318 = vmatmul.mubr.f32.vlgmr.msra.gmra.mxu0 %v1580_v41  ;;  %1327 = vmatmul.mubr.f32.vlgmr.msra.gmra.mxu1 %v1532_v27 }
 0x2d3   :  { %1320 = vmatprep.mubr.f32.mxu0 %v1572_v39  ;;  %1329 = vmatprep.mubr.f32.mxu1 %v1521_v24 }
 0x2d6   :  { %1321 = vmatmul.mubr.f32.gmra.mxu0 %v1566_v37  ;;  %1330 = vmatmul.mubr.f32.gmra.mxu1 %v1515_v22  ;;  %v1867_v22 = vld [vmem:[%s1955_s5] ss:$0 sm:$0xff] }
 0x2d7   :  { %1323 = vmatprep.mubr.f32.mxu0 %v1555_v34  ;;  %1332 = vmatprep.mubr.f32.mxu1 %v1503_v19 }
 0x2da   :  { %1324 = vmatmul.mubr.f32.gmra.mxu0 %v1549_v32  ;;  %1333 = vmatmul.mubr.f32.gmra.mxu1 %v1495_v16 }
 0x2db   :  { %1335 = vmatprep.mubr.f32.mxu1 %v1481_v12 }
 0x2de   :  { %1336 = vmatmul.mubr.f32.gmra.mxu1 %v1469_v8 }
 0x2df   :  { %1338 = vmatprep.mubr.f32.mxu1 %v1475_v10 }
 0x2e2   :  { %1339 = vmatmul.mubr.f32.gmra.mxu1 %v1464_v6 }
 0x392   :  { %v1319_v24 = vpop.f32.mrf.mxu0  ;;  %v1328_v27 = vpop.f32.mrf.mxu1 }
 0x393   :  { %v890_v19 = vmul.f32 %v1695_v38, %v1319_v24  ;;  %v896_v32 = vmul.f32 %v1671_v25, %v1328_v27 }
 0x394   :  { %v810_v16 = vpop.f32.mrf.mxu0  ;;  %v840_v34 = vpop.f32.mrf.mxu1 }
 0x395   :  { %v913_v12 = vadd.f32 %v1867_v22, %v890_v19  ;;  %v919_v8 = vadd.f32 %v1867_v22, %v896_v32  ;;  %v889_v10 = vmul.f32 %v1699_v40, %v810_v16  ;;  %v895_v6 = vmul.f32 %v1675_v28, %v840_v34 }
 0x396   :  { %v1322_v37 = vpop.f32.mrf.mxu0  ;;  %v1331_v39 = vpop.f32.mrf.mxu1 }
 0x397   :  { %v929_v41 = vmax.f32 %v913_v12, 0.0  ;;  %v935_v29 = vmax.f32 %v919_v8, 0.0  ;;  %v912_v0 = vadd.f32 %v1867_v22, %v889_v10  ;;  %v918_v38 = vadd.f32 %v1867_v22, %v895_v6 }
 0x398   :  { %v892_v25 = vmul.f32 %v1687_v35, %v1322_v37  ;;  %v898_v45 = vmul.f32 %v1664_v11, %v1331_v39  ;;  %v820_v47 = vpop.f32.mrf.mxu0  ;;  %v850_v46 = vpop.f32.mrf.mxu1 }
 0x399   :  { %945 = vst [vmem:[%s1956_s7 + $0x8] sm:$0xff] %v929_v41  ;;  %951 = vst [vmem:[%s1956_s7 + $0x38] sm:$0xff] %v935_v29  ;;  %v928_v28 = vmax.f32 %v912_v0, 0.0  ;;  %v934_v40 = vmax.f32 %v918_v38, 0.0  ;;  %v891_v48 = vmul.f32 %v1691_v36, %v820_v47  ;;  %v897_v50 = vmul.f32 %v1667_v20, %v850_v46 }
 0x39a   :  { %v915_v35 = vadd.f32 %v1867_v22, %v892_v25  ;;  %v921_v11 = vadd.f32 %v1867_v22, %v898_v45  ;;  %v1325_v51 = vpop.f32.mrf.mxu0  ;;  %v1334_v52 = vpop.f32.mrf.mxu1 }
 0x39b   :  { %944 = vst [vmem:[%s1956_s7] sm:$0xff] %v928_v28  ;;  %950 = vst [vmem:[%s1956_s7 + $0x30] sm:$0xff] %v934_v40  ;;  %v914_v53 = vadd.f32 %v1867_v22, %v891_v48  ;;  %v920_v36 = vadd.f32 %v1867_v22, %v897_v50  ;;  %v894_v20 = vmul.f32 %v1679_v31, %v1325_v51 }
 0x39c   :  { %v900_v55 = vmul.f32 %v1658_v57, %v1334_v52  ;;  %v931_v56 = vmax.f32 %v915_v35, 0.0  ;;  %v937_v58 = vmax.f32 %v921_v11, 0.0  ;;  %v830_v61 = vpop.f32.mrf.mxu0  ;;  %v860_v63 = vpop.f32.mrf.mxu1 }
 0x39d   :  { %v930_v3 = vmax.f32 %v914_v53, 0.0  ;;  %v936_v5 = vmax.f32 %v920_v36, 0.0  ;;  %v917_v17 = vadd.f32 %v1867_v22, %v894_v20  ;;  %v893_v57 = vmul.f32 %v1683_v33, %v830_v61 }
 0x39e   :  { %v923_v7 = vadd.f32 %v1867_v22, %v900_v55  ;;  %947 = vst [vmem:[%s1956_s7 + $0x18] sm:$0xff] %v931_v56  ;;  %953 = vst [vmem:[%s1956_s7 + $0x48] sm:$0xff] %v937_v58  ;;  %v899_v31 = vmul.f32 %v1661_v2, %v860_v63  ;;  %v1337_v14 = vpop.f32.mrf.mxu1 }
 0x39f   :  { %946 = vst [vmem:[%s1956_s7 + $0x10] sm:$0xff] %v930_v3  ;;  %952 = vst [vmem:[%s1956_s7 + $0x40] sm:$0xff] %v936_v5  ;;  %v933_v15 = vmax.f32 %v917_v17, 0.0  ;;  %v902_v26 = vmul.f32 %v1652_v49, %v1337_v14  ;;  %v916_v30 = vadd.f32 %v1867_v22, %v893_v57 }
 0x3a0   :  { %v939_v21 = vmax.f32 %v923_v7, 0.0  ;;  %v922_v18 = vadd.f32 %v1867_v22, %v899_v31  ;;  %v870_v33 = vpop.f32.mrf.mxu1 }
 0x3a1   :  { %949 = vst [vmem:[%s1956_s7 + $0x28] sm:$0xff] %v933_v15  ;;  %v925_v2 = vadd.f32 %v1867_v22, %v902_v26  ;;  %v901_v23 = vmul.f32 %v1655_v54, %v870_v33  ;;  %v932_v9 = vmax.f32 %v916_v30, 0.0 }
 0x3a2   :  { %955 = vst [vmem:[%s1956_s7 + $0x58] sm:$0xff] %v939_v21  ;;  %v938_v13 = vmax.f32 %v922_v18, 0.0  ;;  %v1340_v49 = vpop.f32.mrf.mxu1 }
 0x3a3   :  { %v941_v1 = vmax.f32 %v925_v2, 0.0  ;;  %v924_v4 = vadd.f32 %v1867_v22, %v901_v23  ;;  %v904_v43 = vmul.f32 %v1647_v42, %v1340_v49  ;;  %948 = vst [vmem:[%s1956_s7 + $0x20] sm:$0xff] %v932_v9 }
 0x3a4   :  { %954 = vst [vmem:[%s1956_s7 + $0x50] sm:$0xff] %v938_v13  ;;  %v880_v59 = vpop.f32.mrf.mxu1 }
 0x3a5   :  { %957 = vst [vmem:[%s1956_s7 + $0x68] sm:$0xff] %v941_v1  ;;  %v940_v54 = vmax.f32 %v924_v4, 0.0  ;;  %v927_v60 = vadd.f32 %v1867_v22, %v904_v43  ;;  %v903_v62 = vmul.f32 %v1649_v44, %v880_v59 }
 0x3a7   :  { %956 = vst [vmem:[%s1956_s7 + $0x60] sm:$0xff] %v940_v54  ;;  %v943_v42 = vmax.f32 %v927_v60, 0.0  ;;  %v926_v24 = vadd.f32 %v1867_v22, %v903_v62 }
 0x3a9   :  { %959 = vst [vmem:[%s1956_s7 + $0x78] sm:$0xff] %v943_v42  ;;  %v942_v27 = vmax.f32 %v926_v24, 0.0 }
 0x3ab   :  { %958 = vst [vmem:[%s1956_s7 + $0x70] sm:$0xff] %v942_v27 }

</bundles_post_ra>
